<compile_context>
chip_gen: v6e
topology: v6e:2x2x1
jax: 0.10.0
libtpu: 0.0.40
codegen_flags: <defaults>
</compile_context>

<pallas_src>
import math

import jax
import jax.numpy as jnp
from jax.experimental import pallas as pl
from jax.experimental.pallas import tpu as pltpu

# Matches the PyTorch module: self.head_dim = 1  ->  scale = 1/sqrt(1) = 1.0.
# (The module divides by sqrt(self.head_dim), NOT sqrt(D); head_dim is
# hard-coded to 1 in the spec, so this is intentional.)
HEAD_DIM = 1
SCALE = 1.0 / math.sqrt(HEAD_DIM)


def _sdpa_kernel(q_ref, k_ref, v_ref, mask_ref, o_ref):
    # q_ref/k_ref/v_ref: (BH, S, D) f32 in VMEM; mask_ref: (S, S) or (BH, S, S) f32.
    q = q_ref[...]
    k = k_ref[...]
    v = v_ref[...]
    m = mask_ref[...]

    # Batched logits for every head at once; contracts the last dims of q and k
    # directly (no transpose materialized in-kernel).
    qk = jnp.einsum("bqd,bkd->bqk", q, k, preferred_element_type=jnp.float32)
    if SCALE != 1.0:  # static Python branch; SCALE is 1.0 for this module
        qk = qk * SCALE
    # Additive 0/1 mask (PyTorch `qk + attn_mask` semantics, bool -> 0.0/1.0).
    # Broadcasting an (S, S) mask across the BH axis is a free per-vreg op.
    qk = qk + m

    # Numerically-stable softmax over the key axis (kept fully in f32; exact
    # divide — approx reciprocal cost accuracy without buying anything here).
    qk_max = jnp.max(qk, axis=-1, keepdims=True)
    p = jnp.exp(qk - qk_max)
    denom = jnp.sum(p, axis=-1, keepdims=True)
    attn = p / denom

    out = jnp.einsum("bqk,bkd->bqd", attn, v, preferred_element_type=jnp.float32)
    o_ref[...] = out.astype(o_ref.dtype)


def sdpa_pallas(query, key, value, attn_mask):
    """query/key/value: (B, H, S, D); attn_mask: broadcastable to (B, H, S, S)."""
    B, H, S, D = query.shape
    BH = B * H

    q = query.reshape(BH, S, D)
    k = key.reshape(BH, S, D)
    v = value.reshape(BH, S, D)

    # Promote the mask to f32 (PyTorch additive-bool semantics). If all leading
    # dims are singletons (the spec's (1,1,S,S) case) pass just (S, S) and let
    # the kernel broadcast across heads; otherwise fall back to a full
    # per-head mask.
    m = attn_mask.astype(jnp.float32)
    if m.ndim > 2 and all(int(s) == 1 for s in m.shape[:-2]):
        m = m.reshape(m.shape[-2], m.shape[-1])          # (S, S)
    elif m.shape != (S, S):
        m = jnp.broadcast_to(m, (B, H, S, S)).reshape(BH, S, S)

    vmem = pl.BlockSpec(memory_space=pltpu.MemorySpace.VMEM)
    cost = pl.CostEstimate(
        flops=2 * 2 * BH * S * S * D,              # QK^T + PV
        transcendentals=BH * S * S,                # exp
        bytes_accessed=(4 * BH * S * D + m.size) * 4,
    )

    # Single kernel invocation (no grid): whole arrays are staged into VMEM
    # once (~6 KB total footprint), the mask is DMA'd exactly once at its
    # un-broadcast size, and there is no per-head grid-step overhead.
    out = pl.pallas_call(
        _sdpa_kernel,
        out_shape=jax.ShapeDtypeStruct((BH, S, D), query.dtype),
        in_specs=[vmem, vmem, vmem, vmem],
        out_specs=vmem,
        cost_estimate=cost,
    )(q, k, v, m)

    # TODO(synk): if S/D ever scale up (e.g. BH*S*S*4B > ~8 MiB), switch to a
    # flash-style KV-tiled grid with an f32 accumulator scratch, a lane-dense
    # (128-multiple) output slab, explicit vmem_limit_bytes (halve tiles for
    # v7x's 64 MiB VMEM), and dimension_semantics=("parallel",) over BH so v7x
    # can shard heads across its 2 TensorCores.  Not worth it for a 2 KB result.
    return out.reshape(B, H, S, D)


def sdpa_reference(query, key, value, attn_mask):
    qk = jnp.matmul(query, jnp.swapaxes(key, -2, -1)) * SCALE
    qk = qk + attn_mask.astype(jnp.float32)
    attn = jax.nn.softmax(qk, axis=-1)
    return jnp.matmul(attn, value)


if __name__ == "__main__":
    B, H, S, D = 2, 2, 8, 16

    rng = jax.random.PRNGKey(0)
    kq, kk, kv = jax.random.split(rng, 3)
    query = jax.random.normal(kq, (B, H, S, D), dtype=jnp.float32)
    key = jax.random.normal(kk, (B, H, S, D), dtype=jnp.float32)
    value = jax.random.normal(kv, (B, H, S, D), dtype=jnp.float32)

    # attn_mask = logical_not(eye(S)) with two leading singleton dims (bool).
    attn_mask = jnp.logical_not(jnp.eye(S, dtype=bool))[None, None, :, :]

    out = sdpa_pallas(query, key, value, attn_mask)
    out = jax.block_until_ready(out)

    ref = sdpa_reference(query, key, value, attn_mask)
    assert out.shape == (B, H, S, D)
    err = float(jnp.max(jnp.abs(out - ref)))
    assert jnp.allclose(out, ref, atol=1e-4, rtol=1e-4), err

    print("KERNEL_OK")
</pallas_src>

<mosaic_0001>
module attributes {stable_mosaic.version = 11 : i64} {
  func.func @_sdpa_kernel(%arg0: memref<4x8x16xf32, #tpu.memory_space<vmem>>, %arg1: memref<4x8x16xf32, #tpu.memory_space<vmem>>, %arg2: memref<4x8x16xf32, #tpu.memory_space<vmem>>, %arg3: memref<8x8xf32, #tpu.memory_space<vmem>>, %arg4: memref<4x8x16xf32, #tpu.memory_space<vmem>>) attributes {dimension_semantics = [], scalar_prefetch = 0 : i64, scratch_operands = 0 : i64, tpu.core_type = #tpu.core_type<tc>} {
    %c0 = arith.constant 0 : index
    %c0_0 = arith.constant 0 : index
    %c0_1 = arith.constant 0 : index
    %0 = vector.load %arg0[%c0, %c0_0, %c0_1] : memref<4x8x16xf32, #tpu.memory_space<vmem>>, vector<4x8x16xf32>
    %c0_2 = arith.constant 0 : index
    %c0_3 = arith.constant 0 : index
    %c0_4 = arith.constant 0 : index
    %1 = vector.load %arg1[%c0_2, %c0_3, %c0_4] : memref<4x8x16xf32, #tpu.memory_space<vmem>>, vector<4x8x16xf32>
    %c0_5 = arith.constant 0 : index
    %c0_6 = arith.constant 0 : index
    %c0_7 = arith.constant 0 : index
    %2 = vector.load %arg2[%c0_5, %c0_6, %c0_7] : memref<4x8x16xf32, #tpu.memory_space<vmem>>, vector<4x8x16xf32>
    %c0_8 = arith.constant 0 : index
    %c0_9 = arith.constant 0 : index
    %3 = vector.load %arg3[%c0_8, %c0_9] : memref<8x8xf32, #tpu.memory_space<vmem>>, vector<8x8xf32>
    "tpu.trace_start"() <{level = 10 : i32, message = "bqd,bkd->bqk"}> : () -> ()
    %cst = arith.constant dense<0.000000e+00> : vector<4x8x8xf32>
    %4 = tpu.matmul %0, %1, %cst {dimension_numbers = #tpu.dot_dimension_numbers<[2], [2], [1], [1], [0, 0, 0, 1, 1, 1], [0], [0]>} : vector<4x8x16xf32>, vector<4x8x16xf32>, vector<4x8x8xf32> -> vector<4x8x8xf32>
    "tpu.trace_stop"() : () -> ()
    %5 = vector.shape_cast %3 : vector<8x8xf32> to vector<1x8x8xf32>
    %6 = vector.broadcast %5 : vector<1x8x8xf32> to vector<4x8x8xf32>
    %7 = arith.addf %4, %6 : vector<4x8x8xf32>
    %cst_10 = arith.constant dense<0xFF800000> : vector<4x8xf32>
    %8 = vector.multi_reduction <maximumf>, %7, %cst_10 [2] : vector<4x8x8xf32> to vector<4x8xf32>
    %9 = vector.shape_cast %8 : vector<4x8xf32> to vector<4x8x1xf32>
    %10 = vector.broadcast %9 : vector<4x8x1xf32> to vector<4x8x8xf32>
    %11 = arith.subf %7, %10 : vector<4x8x8xf32>
    %12 = math.exp %11 : vector<4x8x8xf32>
    %cst_11 = arith.constant dense<0.000000e+00> : vector<4x8xf32>
    %13 = vector.multi_reduction <add>, %12, %cst_11 [2] : vector<4x8x8xf32> to vector<4x8xf32>
    %14 = vector.shape_cast %13 : vector<4x8xf32> to vector<4x8x1xf32>
    %15 = vector.broadcast %14 : vector<4x8x1xf32> to vector<4x8x8xf32>
    %16 = arith.divf %12, %15 : vector<4x8x8xf32>
    "tpu.trace_start"() <{level = 10 : i32, message = "bqk,bkd->bqd"}> : () -> ()
    %cst_12 = arith.constant dense<0.000000e+00> : vector<4x8x16xf32>
    %17 = tpu.matmul %16, %2, %cst_12 {dimension_numbers = #tpu.dot_dimension_numbers<[2], [1], [1], [2], [0, 0, 0, 1, 1, 2], [0], [0]>} : vector<4x8x8xf32>, vector<4x8x16xf32>, vector<4x8x16xf32> -> vector<4x8x16xf32>
    "tpu.trace_stop"() : () -> ()
    %c0_13 = arith.constant 0 : index
    %c0_14 = arith.constant 0 : index
    %c0_15 = arith.constant 0 : index
    %18 = vector.load %arg4[%c0_13, %c0_14, %c0_15] : memref<4x8x16xf32, #tpu.memory_space<vmem>>, vector<4x8x16xf32>
    tpu.vector_store %arg4[%c0_13, %c0_14, %c0_15], %17 {strides = array<i32>} : memref<4x8x16xf32, #tpu.memory_space<vmem>>, vector<4x8x16xf32>,
    return
  }
}

</mosaic_0001>

<bundles_post_ra>
// kernel: tpu_custom_call.1
= control target key start
LH: loop header
LB: loop body
LE: loop exit
PB: predicated region body
PF: predicated region fallthrough
CT: control target
= control target key end

     0   :  { %9 = vsyncpa [#allocation3], 0  ;;  %s1059_s0 = inlined_call_operand.hbm [shape: f32[4,8,16], index: 0, kind: input, shape index: {}]   ;;  %s1060_s1 = inlined_call_operand.hbm [shape: f32[4,8,16], index: 1, kind: input, shape index: {}]   ;;  %s1061_s2 = inlined_call_operand.hbm [shape: f32[4,8,16], index: 2, kind: input, shape index: {}]   ;;  %s1062_s3 = inlined_call_operand.hbm [shape: f32[8,8], index: 3, kind: input, shape index: {}]   ;;  %s1063_s4 = inlined_call_operand.hbm [shape: f32[4,8,16], index: 4, kind: output, shape index: {}]  }
   0x1   :  { %10 = vsyncpa [#allocation6], 0 }
   0x2   :  { %11 = vsyncpa [#allocation9], 0 }
   0x3   :  { %12 = vsyncpa [#allocation4], 0  ;;  %s950_s15 = smov [#allocation5]   ;;  %s951_s17 = smov [#allocation2]  }
   0x4   :  { %s30_s16 = sshll.u32 %s950_s15, 4  ;;  %s18_s18 = sshll.u32 %s951_s17, 4  ;;  %s31_s16 = int_to_ptr.vmem [resolvable:$true] %s30_s16  ;;  %s19_s18 = int_to_ptr.vmem [resolvable:$true] %s18_s18 }
   0x5   :  { %s850_s19 = scalar_lea.vmem %s31_s16, 512  ;;  %p855_p1 = scmp.lt.s32.totalorder %s31_s16, %s31_s16 }
   0x6   :  { %p851_p0 = scmp.ne.s32.totalorder %s31_s16, %s850_s19  ;;  %p856_p2 = scmp.lt.s32.totalorder %s850_s19, %s850_s19 }
   0x8   :  { %p857_p3 = por %p856_p2, %p855_p1 }
   0xa   :  { %p858_p4 = pnand %p857_p3, %p851_p0 }
   0xc   :  { %861 = shalt.err (!%p858_p4)
}
   0xd   :  { %s952_s20 = smov 128   ;;  %s953_s21 = smov 8  }
   0xe   :  { %36 = dma.hbm_to_vmem [thread:$0]  %s1060_s1, 512, %s31_s16, [#allocation6], %s952_s20, %s952_s20, %s953_s21  }
   0xf   :  { %s870_s24 = scalar_lea.vmem %s19_s18, 512  ;;  %p875_p6 = scmp.lt.s32.totalorder %s19_s18, %s19_s18 }
  0x10   :  { %p871_p5 = scmp.ne.s32.totalorder %s19_s18, %s870_s24  ;;  %p876_p7 = scmp.lt.s32.totalorder %s870_s24, %s870_s24 }
  0x12   :  { %p877_p8 = por %p876_p7, %p875_p6 }
  0x14   :  { %p878_p9 = pnand %p877_p8, %p871_p5 }
  0x16   :  { %881 = shalt.err (!%p878_p9)
}
  0x17   :  { %24 = dma.hbm_to_vmem [thread:$0]  %s1059_s0, 512, %s19_s18, [#allocation3], %s952_s20, %s952_s20, %s953_s21  }
  0x18   :  { %s954_s27 = smov [#allocation7]   ;;  %s955_s29 = smov [#allocation8]  }
  0x19   :  { %s42_s28 = sshll.u32 %s954_s27, 4  ;;  %s55_s30 = sshll.u32 %s955_s29, 4  ;;  %s43_s28 = int_to_ptr.vmem [resolvable:$true] %s42_s28  ;;  %s56_s30 = int_to_ptr.vmem [resolvable:$true] %s55_s30 }
  0x1a   :  { %s890_s1 = scalar_lea.vmem %s43_s28, 512  ;;  %p895_p11 = scmp.lt.s32.totalorder %s43_s28, %s43_s28 }
  0x1b   :  { %p891_p10 = scmp.ne.s32.totalorder %s43_s28, %s890_s1  ;;  %p896_p12 = scmp.lt.s32.totalorder %s890_s1, %s890_s1 }
  0x1d   :  { %p897_p13 = por %p896_p12, %p895_p11 }
  0x1f   :  { %p898_p0 = pnand %p897_p13, %p891_p10 }
  0x21   :  { %901 = shalt.err (!%p898_p0)
}
  0x22   :  { %48 = dma.hbm_to_vmem [thread:$0]  %s1061_s2, 512, %s43_s28, [#allocation6], %s952_s20, %s952_s20, %s953_s21  }
  0x23   :  { %s910_s0 = scalar_lea.vmem %s56_s30, 128  ;;  %p915_p2 = scmp.lt.s32.totalorder %s56_s30, %s56_s30 }
  0x24   :  { %p911_p1 = scmp.ne.s32.totalorder %s56_s30, %s910_s0  ;;  %p916_p3 = scmp.lt.s32.totalorder %s910_s0, %s910_s0 }
  0x26   :  { %p917_p4 = por %p916_p3, %p915_p2 }
  0x28   :  { %p918_p5 = pnand %p917_p4, %p911_p1 }
  0x2a   :  { %921 = shalt.err (!%p918_p5)
}
  0x2b   :  { %58 = dma.hbm_to_vmem [thread:$0]  %s1062_s3, 128, %s56_s30, [#allocation9]  }
  0x2c   :  { %942 = dma.done.wait [#allocation3], 512  }
  0x2d   :  { %943 = vsyncadd [#allocation3], 4294966784 }
  0x2e   :  { %944 = dma.done.wait [#allocation6], 1024  }
  0x2f   :  { %945 = vsyncadd [#allocation6], 4294966272 }
  0x30   :  { %946 = dma.done.wait [#allocation9], 128  }
  0x31   :  { %947 = vsyncadd [#allocation9], 4294967168  ;;  %v956_v0 = vmov 0.0   ;;  %vm957_vm0 = vmmov 0   ;;  %vm84_vm1 = vcmask 130048   ;;  %v75_v1 = vld [vmem:[#allocation5] sm:$0xff] }
  0x32   :  { %777 = vmatprep.subr.mxu0 %v956_v0  ;;  %779 = vmatprep.mubr.msk.f32.mxu0 %vm957_vm0, %v956_v0  ;;  %v76_v2 = vld [vmem:[#allocation5 + $0x8] sm:$0xff]  ;;  %v71_v3 = vld [vmem:[#allocation2] sm:$0xff]  ;;  %v77_v5 = vld [vmem:[#allocation5 + $0x10] sm:$0xff]  ;;  %vm389_vm2 = vcmask 64512   ;;  %s958_s2 = smov [#allocation10]  }
  0x33   :  { %782 = vmatprep.subr.mxu1 %v956_v0  ;;  %784 = vmatprep.mubr.msk.f32.mxu1 %vm957_vm0, %v956_v0  ;;  %v72_v4 = vld [vmem:[#allocation2 + $0x8] sm:$0xff]  ;;  %v78_v6 = vld [vmem:[#allocation5 + $0x18] sm:$0xff]  ;;  %v73_v7 = vld [vmem:[#allocation2 + $0x10] sm:$0xff]  ;;  %s735_s3 = sshll.u32 %s958_s2, 4  ;;  %s736_s3 = int_to_ptr.vmem [resolvable:$true] %s735_s3 }
  0x34   :  { %778 = vmatpush3.xpose.msk.msra.mxu0 %vm84_vm1, %v75_v1  ;;  %783 = vmatpush3.xpose.msk.msra.mxu1 %vm84_vm1, %v76_v2  ;;  %v74_v8 = vld [vmem:[#allocation2 + $0x18] sm:$0xff]  ;;  %v83_v9 = vld [vmem:[#allocation8] sm:$0xff]  ;;  %v80_v47 = vld [vmem:[#allocation7 + $0x8] sm:$0xff]  ;;  %s922_s9 = scalar_lea.vmem %s736_s3, 512  ;;  %p927_p7 = scmp.lt.s32.totalorder %s736_s3, %s736_s3 }
  0x35   :  { %787 = vmatprep.subr.mxu0 %v956_v0  ;;  %792 = vmatprep.subr.mxu1 %v956_v0  ;;  %v79_v46 = vld [vmem:[#allocation7] sm:$0xff]  ;;  %v81_v54 = vld [vmem:[#allocation7 + $0x10] sm:$0xff]  ;;  %v82_v58 = vld [vmem:[#allocation7 + $0x18] sm:$0xff]  ;;  %p923_p6 = scmp.ne.s32.totalorder %s736_s3, %s922_s9  ;;  %p928_p8 = scmp.lt.s32.totalorder %s922_s9, %s922_s9 }
  0x37   :  { %780 = vmatmul.mubr.msk.f32.vlgmr.msra.gmra.mxu0 %vm84_vm1, %v71_v3  ;;  %785 = vmatmul.mubr.msk.f32.vlgmr.msra.gmra.mxu1 %vm84_vm1, %v72_v4  ;;  %p929_p9 = por %p928_p8, %p927_p7 }
  0x38   :  { %788 = vmatpush3.xpose.msk.msra.mxu0 %vm84_vm1, %v77_v5  ;;  %789 = vmatprep.mubr.msk.f32.mxu0 %vm957_vm0, %v956_v0 }
  0x39   :  { %793 = vmatpush3.xpose.msk.msra.mxu1 %vm84_vm1, %v78_v6  ;;  %794 = vmatprep.mubr.msk.f32.mxu1 %vm957_vm0, %v956_v0  ;;  %p930_p10 = pnand %p929_p9, %p923_p6 }
  0x3a   :  { %797 = vmatprep.subr.mxu0 %v956_v0  ;;  %802 = vmatprep.subr.mxu1 %v956_v0 }
  0x3b   :  { %790 = vmatmul.mubr.msk.f32.vlgmr.msra.gmra.mxu0 %vm84_vm1, %v73_v7 }
  0x3c   :  { %795 = vmatmul.mubr.msk.f32.vlgmr.msra.gmra.mxu1 %vm84_vm1, %v74_v8  ;;  %799 = vmatprep.mubr.msk.f32.mxu0 %vm957_vm0, %v956_v0 }
  0x3d   :  { %804 = vmatprep.mubr.msk.f32.mxu1 %vm957_vm0, %v956_v0  ;;  %798 = vmatpush3.msra.mxu0 %v79_v46 }
  0x3e   :  { %807 = vmatprep.subr.mxu0 %v956_v0  ;;  %803 = vmatpush3.msra.mxu1 %v80_v47 }
  0x3f   :  { %812 = vmatprep.subr.mxu1 %v956_v0 }
  0xf7   :  { %v157_v10 = vpop.f32.mrf.mxu0  ;;  %v233_v11 = vpop.f32.mrf.mxu1 }
  0xf8   :  { %v158_v12 = vadd.f32 %v157_v10, %v83_v9  ;;  %v234_v13 = vadd.f32 %v233_v11, %v83_v9 }
  0xf9   :  { %v781_v14 = vpop.f32.mrf.mxu0  ;;  %v786_v15 = vpop.f32.mrf.mxu1 }
  0xfa   :  { %v390_v16 = vsel %vm389_vm2, %v158_v12, -inf  ;;  %v393_v20 = vsel %vm389_vm2, %v234_v13, -inf }
  0xfb   :  { %391 = vmax.xlane.f32.xlu0 %v390_v16  ;;  %v309_v17 = vpop.f32.mrf.mxu0 }
  0xfc   :  { %v310_v18 = vadd.f32 %v309_v17, %v83_v9  ;;  %v385_v19 = vpop.f32.mrf.mxu1 }
  0xfd   :  { %v791_v21 = vpop.f32.mrf.mxu0  ;;  %v386_v22 = vadd.f32 %v385_v19, %v83_v9 }
  0xfe   :  { %v396_v23 = vsel %vm389_vm2, %v310_v18, -inf  ;;  %v796_v24 = vpop.f32.mrf.mxu1 }
  0xff   :  { %394 = vmax.xlane.f32.xlu0 %v393_v20  ;;  %397 = vmax.xlane.f32.xlu1 %v396_v23  ;;  %v399_v25 = vsel %vm389_vm2, %v386_v22, -inf }
 0x103   :  { %400 = vmax.xlane.f32.xlu1 %v399_v25 }
 0x184   :  { %v392_v26 = vpop.xlane.xlu0 %391 }
 0x185   :  { %v402_v27 = vsub.f32 %v158_v12, %v392_v26 }
 0x187   :  { %v406_v28 = vmul.f32 1.442695, %v402_v27 }
 0x188   :  { %v395_v29 = vpop.xlane.xlu0 %394  ;;  %v398_v30 = vpop.xlane.xlu1 %397 }
 0x189   :  { %826 = vpow2.f32 %v406_v28  ;;  %v403_v31 = vsub.f32 %v234_v13, %v395_v29  ;;  %v404_v32 = vsub.f32 %v310_v18, %v398_v30 }
 0x18b   :  { %v408_v33 = vmul.f32 1.442695, %v403_v31  ;;  %v410_v34 = vmul.f32 1.442695, %v404_v32 }
 0x18c   :  { %v401_v35 = vpop.xlane.xlu1 %400 }
 0x18d   :  { %828 = vpow2.f32 %v408_v33  ;;  %v405_v36 = vsub.f32 %v386_v22, %v401_v35 }
 0x18e   :  { %830 = vpow2.f32 %v410_v34 }
 0x18f   :  { %v412_v37 = vmul.f32 1.442695, %v405_v36 }
 0x191   :  { %832 = vpow2.f32 %v412_v37 }
 0x196   :  { %v827_v38 = vpop.eup %826 }
 0x197   :  { %v414_v39 = vsel %vm389_vm2, %v827_v38, 0.0 }
 0x198   :  { %415 = vadd.xlane.f32.xlu0 %v414_v39 }
 0x19a   :  { %v829_v40 = vpop.eup %828 }
 0x19b   :  { %v831_v41 = vpop.eup %830  ;;  %v417_v42 = vsel %vm389_vm2, %v829_v40, 0.0 }
 0x19c   :  { %418 = vadd.xlane.f32.xlu1 %v417_v42  ;;  %v420_v43 = vsel %vm389_vm2, %v831_v41, 0.0 }
 0x19d   :  { %421 = vadd.xlane.f32.xlu0 %v420_v43 }
 0x19e   :  { %v833_v44 = vpop.eup %832 }
 0x19f   :  { %v423_v45 = vsel %vm389_vm2, %v833_v44, 0.0 }
 0x1a0   :  { %424 = vadd.xlane.f32.xlu1 %v423_v45 }
 0x221   :  { %v416_v48 = vpop.xlane.xlu0 %415 }
 0x222   :  { %834 = vrcp.f32 %v416_v48 }
 0x225   :  { %v419_v49 = vpop.xlane.xlu1 %418 }
 0x226   :  { %v422_v50 = vpop.xlane.xlu0 %421  ;;  %836 = vrcp.f32 %v419_v49 }
 0x227   :  { %838 = vrcp.f32 %v422_v50 }
 0x229   :  { %v425_v51 = vpop.xlane.xlu1 %424 }
 0x22a   :  { %840 = vrcp.f32 %v425_v51 }
 0x22f   :  { %v835_v52 = vpop.eup %834 }
 0x230   :  { %v427_v53 = vmul.f32 %v835_v52, %v827_v38 }
 0x232   :  { %800 = vmatmul.mubr.msk.f32.vlgmr.msra.gmra.mxu0 %vm389_vm2, %v427_v53 }
 0x233   :  { %v837_v55 = vpop.eup %836  ;;  %808 = vmatpush3.msra.mxu0 %v81_v54  ;;  %809 = vmatprep.mubr.msk.f32.mxu0 %vm957_vm0, %v956_v0 }
 0x234   :  { %v839_v56 = vpop.eup %838  ;;  %v429_v57 = vmul.f32 %v837_v55, %v829_v40 }
 0x235   :  { %v431_v59 = vmul.f32 %v839_v56, %v831_v41 }
 0x236   :  { %805 = vmatmul.mubr.msk.f32.vlgmr.msra.gmra.mxu1 %vm389_vm2, %v429_v57 }
 0x237   :  { %v841_v60 = vpop.eup %840  ;;  %810 = vmatmul.mubr.msk.f32.vlgmr.msra.gmra.mxu0 %vm389_vm2, %v431_v59  ;;  %813 = vmatpush3.msra.mxu1 %v82_v58 }
 0x238   :  { %814 = vmatprep.mubr.msk.f32.mxu1 %vm957_vm0, %v956_v0  ;;  %v433_v61 = vmul.f32 %v841_v60, %v833_v44 }
 0x23a   :  { %815 = vmatmul.mubr.msk.f32.vlgmr.msra.gmra.mxu1 %vm389_vm2, %v433_v61 }
 0x2f2   :  { %v503_v62 = vpop.f32.mrf.mxu0 }
 0x2f3   :  { %726 = vst.msk [vmem:[#allocation10] sm:$0xff] %vm84_vm1, %v503_v62 }
 0x2f4   :  { %v801_v63 = vpop.f32.mrf.mxu0 }
 0x2f6   :  { %v576_v1 = vpop.f32.mrf.mxu1 }
 0x2f7   :  { %727 = vst.msk [vmem:[#allocation10 + $0x8] sm:$0xff] %vm84_vm1, %v576_v1  ;;  %v649_v2 = vpop.f32.mrf.mxu0 }
 0x2f8   :  { %728 = vst.msk [vmem:[#allocation10 + $0x10] sm:$0xff] %vm84_vm1, %v649_v2  ;;  %v806_v3 = vpop.f32.mrf.mxu1 }
 0x2f9   :  { %v811_v4 = vpop.f32.mrf.mxu0 }
 0x2fa   :  { %v722_v5 = vpop.f32.mrf.mxu1 }
 0x2fb   :  { %729 = vst.msk [vmem:[#allocation10 + $0x18] sm:$0xff] %vm84_vm1, %v722_v5 }
 0x2fc   :  { %v816_v0 = vpop.f32.mrf.mxu1 }
 0x2fd   :  { %933 = shalt.err (!%p930_p10)
}
 0x2fe   :  { %741 = dma.vmem_to_hbm [thread:$0]  %s736_s3, 512, %s1063_s4, [#allocation4], %s952_s20, %s952_s20, %s953_s21  }
 0x2ff   :  { %948 = dma.done.wait [#allocation4], 512  }
 0x300   :  { %949 = vsyncadd [#allocation4], 4294966784 }
 0x301   :  { %745 = vsyncpa [#allocation3], 1 }
 0x302   :  { %746 = vsyncpa [#allocation6], 1 }
 0x303   :  { %747 = vsyncpa [#allocation9], 1 }
 0x304   :  { %748 = vsyncpa [#allocation4], 1 }

</bundles_post_ra>
